<compile_context>
chip_gen: v7x
topology: tpu7x:2x2x1
jax: 0.10.0
libtpu: 0.0.40
codegen_flags: <defaults>
</compile_context>

<pallas_src>
import functools

import jax
import jax.numpy as jnp
from jax.experimental import pallas as pl
from jax.experimental.pallas import tpu as pltpu

_LANE = 128
_MIB = 1024 * 1024


def _round_up(x, m):
    return ((x + m - 1) // m) * m


def _vmem_capacity_bytes():
    try:
        return int(pltpu.get_tpu_info().vmem_capacity_bytes)
    except Exception:
        return 64 * _MIB  # conservative fallback: assume v7x-sized VMEM


def _sublane_multiple(*dtypes):
    """Packed sublane granularity: 8 rows for f32, 16 for bf16, 32 for int8/fp8."""
    min_itemsize = min(jnp.dtype(d).itemsize for d in dtypes)
    return max(8, 32 // max(1, min_itemsize))


def _step_vmem_bytes(block_rows, H, L, hist_dtype, lr_dtype, out_dtype):
    """Double-buffered VMEM footprint of one grid step (lane-padded widths)."""
    hb = jnp.dtype(hist_dtype).itemsize
    lb = jnp.dtype(lr_dtype).itemsize
    ob = jnp.dtype(out_dtype).itemsize
    per_row = (
        _round_up(H, _LANE) * hb
        + _round_up(L, _LANE) * lb
        + _round_up(H + L, _LANE) * ob
    )
    return 2 * block_rows * per_row  # x2: double-buffered pipeline


def _choose_block_rows(rows, H, L, hist_dtype, lr_dtype, out_dtype,
                       tile_budget_bytes, sublane_mult):
    """Largest sublane-aligned row chunk whose double-buffered tiles fit budget."""
    per_row = _step_vmem_bytes(1, H, L, hist_dtype, lr_dtype, out_dtype)
    max_rows = tile_budget_bytes // max(1, per_row)
    max_rows = (max_rows // sublane_mult) * sublane_mult
    # Floor at one packed-sublane group.  For extremely wide H this floor can
    # exceed the nominal budget; vmem_limit_bytes is raised to match below.
    # TODO(synk): add a second (column) grid axis over H in 128-lane chunks for
    # very wide hist rows instead of relying on this floor.
    max_rows = max(max_rows, sublane_mult)

    if rows > max_rows:
        return max_rows  # already multiple grid steps

    block_rows = rows  # block == full row extent -> always a legal block shape
    # Keep >= 2 grid steps on the "parallel" axis when the row count allows it,
    # so v7x's second TensorCore gets work (one extra cheap step on 1-TC chips).
    if rows >= 2 * sublane_mult:
        half = _round_up((rows + 1) // 2, sublane_mult)
        if half < rows:
            block_rows = half
    return block_rows


def _flatcat_kernel(hist_ref, lr_ref, out_ref, *, hist_width):
    # Two direct slab stores into the fused output tile.  Dtype promotion
    # (torch.cat semantics) happens here on the VPU — free under the HBM bound.
    # When hist_width % 128 == 0 (e.g. 16x16 spatial = 256) the dominant hist
    # store is fully lane-aligned/unmasked; only the small lr residual store is
    # masked / crosses a vreg boundary.
    out_ref[:, :hist_width] = hist_ref[...].astype(out_ref.dtype)
    out_ref[:, hist_width:] = lr_ref[...].astype(out_ref.dtype)


def flat_cat(hist, lr):
    """Pallas implementation of FlatCat.forward((hist, lr)).

    hist: (B, C, *hist_shape) array
    lr:   (B, C, L) array
    returns (B, C, prod(hist_shape) + L)
    """
    assert hist.shape[:2] == lr.shape[:2], "batch/channel dims must match"
    B, C = hist.shape[:2]
    H = 1
    for d in hist.shape[2:]:
        H *= d
    L = lr.shape[-1]

    # torch.cat promotes to a common dtype; no-op when dtypes agree.
    # (jnp.result_type approximates torch promotion; exact when dtypes match.)
    out_dtype = jnp.result_type(hist.dtype, lr.dtype)

    rows = B * C
    # Pure reshapes (no wrapper casts — promotion happens inside the kernel).
    hist_flat = hist.reshape(rows, H)
    lr_flat = lr.reshape(rows, L)

    # Per-generation step sizing: v5e/v6e have 128 MiB physical VMEM, v7x 64.
    vmem_cap = _vmem_capacity_bytes()
    if vmem_cap >= 100 * _MIB:   # v5e / v6e
        tile_budget = 48 * _MIB
        limit_cap = 96 * _MIB
    else:                        # v7x (or unknown -> conservative)
        tile_budget = 24 * _MIB
        limit_cap = 40 * _MIB

    sublane_mult = _sublane_multiple(hist.dtype, lr.dtype, out_dtype)
    block_rows = _choose_block_rows(
        rows, H, L, hist.dtype, lr.dtype, out_dtype, tile_budget, sublane_mult)
    grid = (pl.cdiv(rows, block_rows),)

    # Grant the compiler what the (padded, double-buffered) tiles actually need
    # plus headroom, so the sizing math and the scoped limit agree.
    footprint = _step_vmem_bytes(block_rows, H, L, hist.dtype, lr.dtype, out_dtype)
    vmem_limit = min(max(footprint + max(footprint // 4, 2 * _MIB), 16 * _MIB),
                     limit_cap)
    # Wide-H floor safety: never grant less than the tiles need (up to physical).
    vmem_limit = max(vmem_limit, min(footprint + 2 * _MIB, vmem_cap - 4 * _MIB))

    # Pure copy: advertise bytes only so XLA schedules this as bandwidth-bound.
    total_bytes = rows * (
        H * jnp.dtype(hist.dtype).itemsize
        + L * jnp.dtype(lr.dtype).itemsize
        + (H + L) * jnp.dtype(out_dtype).itemsize
    )

    # Boundary note: when rows % block_rows != 0 the final grid step reads
    # padded (garbage) input rows, but its out-of-range output rows are masked
    # by the BlockSpec store, so the result stays exact.
    out_flat = pl.pallas_call(
        functools.partial(_flatcat_kernel, hist_width=H),
        out_shape=jax.ShapeDtypeStruct((rows, H + L), out_dtype),
        grid=grid,
        in_specs=[
            pl.BlockSpec((block_rows, H), lambda r: (r, 0)),
            pl.BlockSpec((block_rows, L), lambda r: (r, 0)),
        ],
        out_specs=pl.BlockSpec((block_rows, H + L), lambda r: (r, 0)),
        compiler_params=pltpu.CompilerParams(
            dimension_semantics=("parallel",),
            vmem_limit_bytes=int(vmem_limit),
        ),
        cost_estimate=pl.CostEstimate(
            flops=0, transcendentals=0, bytes_accessed=int(total_bytes)
        ),
    )(hist_flat, lr_flat)

    return out_flat.reshape(B, C, H + L)


if __name__ == "__main__":
    key = jax.random.PRNGKey(0)
    k1, k2 = jax.random.split(key)

    # Shapes consistent with the module's forward:
    #   hist: (batch=2, channels=4, 16, 16), lr: (batch=2, channels=4, seq=8)
    hist = jax.random.normal(k1, (2, 4, 16, 16), dtype=jnp.float32)
    lr = jax.random.normal(k2, (2, 4, 8), dtype=jnp.float32)

    out = flat_cat(hist, lr)
    out = jax.block_until_ready(out)

    # Reference (pure JAX) check of semantics.
    ref = jnp.concatenate(
        [hist.reshape(hist.shape[0], hist.shape[1], -1), lr], axis=-1
    )
    assert out.shape == ref.shape, (out.shape, ref.shape)
    assert out.dtype == ref.dtype, (out.dtype, ref.dtype)
    assert jnp.allclose(out, ref), "mismatch vs reference"

    # FlatCatReverse is the inverse (pure slicing/reshape glue); verify round-trip.
    lr_last = lr.shape[-1]
    hist_back = out[:, :, :-lr_last].reshape(hist.shape)
    lr_back = out[:, :, -lr_last:]
    assert jnp.allclose(hist_back, hist) and jnp.allclose(lr_back, lr)

    # Mixed-dtype check: promotion happens inside the kernel (torch.cat
    # semantics) and exercises the dtype-aware sublane rounding path.
    hist_bf = hist.astype(jnp.bfloat16)
    out_mixed = jax.block_until_ready(flat_cat(hist_bf, lr))
    ref_mixed = jnp.concatenate(
        [hist_bf.reshape(hist_bf.shape[0], hist_bf.shape[1], -1), lr], axis=-1
    )
    assert out_mixed.dtype == ref_mixed.dtype, (out_mixed.dtype, ref_mixed.dtype)
    assert jnp.allclose(out_mixed, ref_mixed), "mismatch vs mixed-dtype reference"

    print("KERNEL_OK")
</pallas_src>

<mosaic_0001>
module attributes {stable_mosaic.version = 11 : i64} {
  func.func @_flatcat_kernel(%arg0: i32, %arg1: memref<8x256xf32, #tpu.memory_space<vmem>>, %arg2: memref<8x8xf32, #tpu.memory_space<vmem>>, %arg3: memref<8x264xf32, #tpu.memory_space<vmem>>) attributes {dimension_semantics = [#tpu.dimension_semantics<parallel>], iteration_bounds = array<i64: 1>, scalar_prefetch = 0 : i64, scratch_operands = 0 : i64, tpu.core_type = #tpu.core_type<tc>, window_params = [{transform_indices = @transform_0, window_bounds = array<i64: 8, 256>}, {transform_indices = @transform_1, window_bounds = array<i64: 8, 8>}, {transform_indices = @transform_2, window_bounds = array<i64: 8, 264>}]} {
    %c0 = arith.constant 0 : index
    %c0_0 = arith.constant 0 : index
    %0 = vector.load %arg1[%c0, %c0_0] : memref<8x256xf32, #tpu.memory_space<vmem>>, vector<8x256xf32>
    %c0_1 = arith.constant 0 : index
    %c0_2 = arith.constant 0 : index
    %1 = vector.load %arg3[%c0_1, %c0_2] : memref<8x264xf32, #tpu.memory_space<vmem>>, vector<8x256xf32>
    tpu.vector_store %arg3[%c0_1, %c0_2], %0 {strides = array<i32>} : memref<8x264xf32, #tpu.memory_space<vmem>>, vector<8x256xf32>,
    %c0_3 = arith.constant 0 : index
    %c0_4 = arith.constant 0 : index
    %2 = vector.load %arg2[%c0_3, %c0_4] : memref<8x8xf32, #tpu.memory_space<vmem>>, vector<8x8xf32>
    %c0_5 = arith.constant 0 : index
    %c256 = arith.constant 256 : index
    %3 = vector.load %arg3[%c0_5, %c256] : memref<8x264xf32, #tpu.memory_space<vmem>>, vector<8x8xf32>
    tpu.vector_store %arg3[%c0_5, %c256], %2 {strides = array<i32>} : memref<8x264xf32, #tpu.memory_space<vmem>>, vector<8x8xf32>,
    return
  }
  func.func @transform_0(%arg0: i32) -> (i32, i32) {
    %c0_i32 = arith.constant 0 : i32
    %c0_i32_0 = arith.constant 0 : i32
    return %arg0, %c0_i32 : i32, i32
  }
  func.func @transform_1(%arg0: i32) -> (i32, i32) {
    %c0_i32 = arith.constant 0 : i32
    %c0_i32_0 = arith.constant 0 : i32
    return %arg0, %c0_i32 : i32, i32
  }
  func.func @transform_2(%arg0: i32) -> (i32, i32) {
    %c0_i32 = arith.constant 0 : i32
    %c0_i32_0 = arith.constant 0 : i32
    return %arg0, %c0_i32 : i32, i32
  }
}

</mosaic_0001>

<bundles_post_ra>
// kernel: tpu_custom_call.1
= control target key start
LH: loop header
LB: loop body
LE: loop exit
PB: predicated region body
PF: predicated region fallthrough
CT: control target
= control target key end

     0   :  { %7 = vsyncpa [#allocation3], 0  ;;  %s188_s0 = inlined_call_operand.hbm [shape: f32[8,256], index: 0, kind: input, shape index: {}]   ;;  %s189_s1 = inlined_call_operand.hbm [shape: f32[8,8], index: 1, kind: input, shape index: {}]   ;;  %s190_s2 = inlined_call_operand.hbm [shape: f32[8,264], index: 2, kind: output, shape index: {}]  }
   0x1   :  { %8 = vsyncpa [#allocation6], 0 }
   0x2   :  { %9 = vsyncpa [#allocation4], 0  ;;  %s134_s9 = smov [#allocation2]   ;;  %s135_s11 = smov [#allocation5]  }
   0x3   :  { %s16_s10 = sshll.u32 %s134_s9, 4  ;;  %s26_s12 = sshll.u32 %s135_s11, 4  ;;  %s17_s10 = int_to_ptr.vmem [resolvable:$true] %s16_s10  ;;  %s27_s12 = int_to_ptr.vmem [resolvable:$true] %s26_s12 }
   0x4   :  { %s62_s15 = scalar_lea.hbm %s188_s0, 256 }
   0x5   :  { %p63_p0 = scmp.ne.s32.totalorder %s188_s0, %s62_s15  ;;  %p66_p1 = scmp.lt.u32.totalorder %s62_s15, %s188_s0 }
   0x7   :  { %p68_p2 = pnand %p66_p1, %p63_p0 }
   0x9   :  { %71 = shalt.err (!%p68_p2)
}
   0xa   :  { %s72_s20 = scalar_lea.vmem %s17_s10, 256  ;;  %p77_p4 = scmp.lt.s32.totalorder %s17_s10, %s17_s10 }
   0xb   :  { %p73_p3 = scmp.ne.s32.totalorder %s17_s10, %s72_s20  ;;  %p78_p5 = scmp.lt.s32.totalorder %s72_s20, %s72_s20 }
   0xd   :  { %p79_p6 = por %p78_p5, %p77_p4 }
   0xf   :  { %p80_p7 = pnand %p79_p6, %p73_p3 }
  0x11   :  { %83 = shalt.err (!%p80_p7)
}
  0x12   :  { %19 = dma.hbm_to_vmem [thread:$0]  %s188_s0, 256, %s17_s10, [#allocation3]  }
  0x13   :  { %s84_s25 = scalar_lea.hbm %s189_s1, 128 }
  0x14   :  { %p85_p8 = scmp.ne.s32.totalorder %s189_s1, %s84_s25  ;;  %p88_p9 = scmp.lt.u32.totalorder %s84_s25, %s189_s1 }
  0x16   :  { %p90_p10 = pnand %p88_p9, %p85_p8 }
  0x18   :  { %93 = shalt.err (!%p90_p10)
}
  0x19   :  { %s94_s30 = scalar_lea.vmem %s27_s12, 128  ;;  %p99_p12 = scmp.lt.s32.totalorder %s27_s12, %s27_s12 }
  0x1a   :  { %p95_p11 = scmp.ne.s32.totalorder %s27_s12, %s94_s30  ;;  %p100_p13 = scmp.lt.s32.totalorder %s94_s30, %s94_s30 }
  0x1c   :  { %p101_p0 = por %p100_p13, %p99_p12 }
  0x1e   :  { %p102_p1 = pnand %p101_p0, %p95_p11 }
  0x20   :  { %105 = shalt.err (!%p102_p1)
}
  0x21   :  { %29 = dma.hbm_to_vmem [thread:$0]  %s189_s1, 128, %s27_s12, [#allocation6]  }
  0x22   :  { %128 = dma.done.wait [#allocation3], 256  }
  0x23   :  { %129 = vsyncadd [#allocation3], 4294967040 }
  0x24   :  { %130 = dma.done.wait [#allocation6], 128  }
  0x25   :  { %131 = vsyncadd [#allocation6], 4294967168  ;;  %s136_s4 = smov [#allocation7]   ;;  %vm41_vm0 = vcmask 64512   ;;  %v36_v0 = vld [vmem:[#allocation2] sm:$0xff]  ;;  %v37_v1 = vld [vmem:[#allocation2 + $0x8] sm:$0xff] }
  0x26   :  { %s49_s5 = sshll.u32 %s136_s4, 4  ;;  %v40_v2 = vld [vmem:[#allocation5] sm:$0xff]  ;;  %38 = vst [vmem:[#allocation7] sm:$0xff] %v36_v0  ;;  %39 = vst [vmem:[#allocation7 + $0x8] sm:$0xff] %v37_v1  ;;  %s50_s5 = int_to_ptr.vmem [resolvable:$true] %s49_s5 }
  0x27   :  { %42 = vst.msk [vmem:[#allocation7 + $0x10] sm:$0xff] %vm41_vm0, %v40_v2  ;;  %s106_s6 = scalar_lea.vmem %s50_s5, 384  ;;  %p111_p3 = scmp.lt.s32.totalorder %s50_s5, %s50_s5 }
  0x28   :  { %p107_p2 = scmp.ne.s32.totalorder %s50_s5, %s106_s6  ;;  %p112_p4 = scmp.lt.s32.totalorder %s106_s6, %s106_s6 }
  0x2a   :  { %p113_p5 = por %p112_p4, %p111_p3 }
  0x2c   :  { %p114_p6 = pnand %p113_p5, %p107_p2 }
  0x2e   :  { %117 = shalt.err (!%p114_p6)
}
  0x2f   :  { %s118_s8 = scalar_lea.hbm %s190_s2, 384 }
  0x30   :  { %p119_p7 = scmp.ne.s32.totalorder %s190_s2, %s118_s8  ;;  %p122_p8 = scmp.lt.u32.totalorder %s118_s8, %s190_s2 }
  0x32   :  { %p124_p9 = pnand %p122_p8, %p119_p7 }
  0x34   :  { %127 = shalt.err (!%p124_p9)
}
  0x35   :  { %52 = dma.vmem_to_hbm [thread:$0]  %s50_s5, 384, %s190_s2, [#allocation4]  }
  0x36   :  { %132 = dma.done.wait [#allocation4], 384  }
  0x37   :  { %133 = vsyncadd [#allocation4], 4294966912 }
  0x38   :  { %56 = vsyncpa [#allocation3], 1 }
  0x39   :  { %57 = vsyncpa [#allocation6], 1 }
  0x3a   :  { %58 = vsyncpa [#allocation4], 1 }

</bundles_post_ra>
